<compile_context>
chip_gen: v5e
topology: v5e:2x2
jax: 0.10.0
libtpu: 0.0.40
codegen_flags: <defaults>
</compile_context>

<pallas_src>
import jax
import jax.numpy as jnp
from jax.experimental import pallas as pl

# ----------------------------- model dims (small, synthetic) ----------------
B = 2        # batch
S = 8        # sequence length
E = 32       # token embedding dim
L = 8        # number of labels (hierarchy nodes)
D = 16       # per-label hidden dim
LD = L * D   # 128 -> lane friendly
V = 100      # vocab size

BM = 8       # batch padded to sublane height
VPAD = 128   # vocab padded to lane width (one-hot matmul K)
NPAD = 128   # logits padded to lane width


# ----------------------------- Pallas kernel --------------------------------
def hiflaky_kernel(tok_ref, table_ref, wp_ref, bp_ref, kt_ref, wo_ref, bo_ref, out_ref):
    # tok_ref   : (BM, S)      int32  token ids (rows >= B are padding)
    # table_ref : (VPAD, E)    bf16   embedding table, rows >= V are zero, pre-scaled by 1/S
    # wp_ref    : (E, LD)      bf16   text -> per-label feature projection
    # bp_ref    : (1, LD)      f32
    # kt_ref    : (LD, LD)     bf16   folded label-graph propagation  kron(A^T, Wg)
    # wo_ref    : (LD, NPAD)   bf16   classifier (columns >= L are zero)
    # bo_ref    : (1, NPAD)    f32
    # out_ref   : (BM, NPAD)   f32    logits (valid block = [:B, :L])

    toks = tok_ref[...]                                               # (BM, S) int32

    # Embedding lookup + mean pool as a one-hot-count matmul:
    #   phi[b, v] = count_s(tok[b, s] == v) ;  pooled = phi @ (table/S) == mean_s table[tok[b,s]]
    # Lane-dense (BM, VPAD) counts; exact small integers so bf16 accumulation is lossless.
    vocab_ids = jax.lax.broadcasted_iota(jnp.int32, (BM, VPAD), 1)    # (BM, VPAD)
    phi = jnp.zeros((BM, VPAD), jnp.bfloat16)
    for s in range(S):                                                # static unroll: S VPU cmp/adds
        phi = phi + (toks[:, s:s + 1] == vocab_ids).astype(jnp.bfloat16)

    pooled = jnp.dot(phi, table_ref[...],
                     preferred_element_type=jnp.float32)              # (BM, E)

    # Propagation.transform: project text repr onto label space, relu
    h = jnp.dot(pooled.astype(jnp.bfloat16), wp_ref[...],
                preferred_element_type=jnp.float32) + bp_ref[...]
    h = jnp.maximum(h, 0.0)                                           # (BM, LD) ~ (BM, L, D) flat

    # StructureEncoder (GCN over label hierarchy): relu(A @ H @ Wg), folded to one matmul
    g = jnp.dot(h.astype(jnp.bfloat16), kt_ref[...],
                preferred_element_type=jnp.float32)
    g = jnp.maximum(g, 0.0)                                           # (BM, LD)

    # Final per-label classifier (lane-dense padded output -> unmasked stores)
    out_ref[...] = jnp.dot(g.astype(jnp.bfloat16), wo_ref[...],
                           preferred_element_type=jnp.float32) + bo_ref[...]


def hiflaky_forward(tokens, table_pad_bf, wp_bf, bp, kt_bf, wo_pad_bf, bo_pad):
    # Wrapper-side layout plumbing only: pad batch rows to the sublane minimum.
    tok_pad = jnp.zeros((BM, S), jnp.int32).at[:B].set(tokens)

    full = lambda shape: pl.BlockSpec(shape, lambda: tuple(0 for _ in shape))
    out = pl.pallas_call(
        hiflaky_kernel,
        out_shape=jax.ShapeDtypeStruct((BM, NPAD), jnp.float32),
        grid=(),
        in_specs=[
            full((BM, S)),
            full((VPAD, E)),
            full((E, LD)),
            full((1, LD)),
            full((LD, LD)),
            full((LD, NPAD)),
            full((1, NPAD)),
        ],
        out_specs=full((BM, NPAD)),
    )(tok_pad, table_pad_bf, wp_bf, bp, kt_bf, wo_pad_bf, bo_pad)
    return out[:B, :L]


# ----------------------------- parameter setup (glue) ------------------------
def init_params(key):
    k_emb, k_wp, k_wg, k_wo = jax.random.split(key, 4)
    emb_table = 0.1 * jax.random.normal(k_emb, (V, E), jnp.float32)
    wp = 0.1 * jax.random.normal(k_wp, (E, LD), jnp.float32)
    bp = jnp.zeros((1, LD), jnp.float32)
    wg = 0.1 * jax.random.normal(k_wg, (D, D), jnp.float32)
    wo = 0.1 * jax.random.normal(k_wo, (LD, L), jnp.float32)
    bo = jnp.zeros((1, L), jnp.float32)

    # Label hierarchy adjacency: node 0 is root, node i's parent is (i-1)//2 (binary tree),
    # symmetric edges + self loops, row-normalized.
    adj = jnp.eye(L, dtype=jnp.float32)
    for i in range(1, L):
        p = (i - 1) // 2
        adj = adj.at[i, p].set(1.0).at[p, i].set(1.0)
    adj = adj / jnp.sum(adj, axis=1, keepdims=True)

    # Fold  relu(A @ H @ Wg)  (H row-major flattened as (L*D,)) into  relu(h_flat @ Kt)
    # with Kt = kron(A^T, Wg):  y[m*D+e] = sum_{l,d} A[m,l] * Wg[d,e] * h[l*D+d].
    kt = jnp.kron(adj.T, wg)                                          # (LD, LD)

    # One-time kernel-operand prep (amortized over all calls):
    #   * embedding table padded to a lane-dense vocab and pre-scaled by 1/S (mean pool),
    #   * bf16 matmul operands,
    #   * lane-dense zero-padded classifier weight / bias.
    table_pad_bf = (jnp.zeros((VPAD, E), jnp.float32)
                    .at[:V].set(emb_table * (1.0 / S))
                    .astype(jnp.bfloat16))
    wp_bf = wp.astype(jnp.bfloat16)
    kt_bf = kt.astype(jnp.bfloat16)
    wo_pad_bf = jnp.zeros((LD, NPAD), jnp.float32).at[:, :L].set(wo).astype(jnp.bfloat16)
    bo_pad = jnp.zeros((1, NPAD), jnp.float32).at[:, :L].set(bo)

    f32_params = (emb_table, wp, bp, adj, wg, wo, bo)
    kernel_params = (table_pad_bf, wp_bf, bp, kt_bf, wo_pad_bf, bo_pad)
    return f32_params, kernel_params


def reference_forward(tokens, emb_table, wp, bp, adj, wg, wo, bo):
    # Plain-JAX f32 reference (mirrors the PyTorch module semantics) for sanity checking.
    emb = jnp.take(emb_table, tokens, axis=0)              # (B, S, E)
    pooled = jnp.mean(emb, axis=1)                         # (B, E)  == token_output
    h = jax.nn.relu(pooled @ wp + bp)                      # (B, LD)
    h3 = h.reshape(B, L, D)
    g = jax.nn.relu(jnp.einsum("ml,bld->bmd", adj, h3) @ wg)
    logits = g.reshape(B, LD) @ wo + bo
    return logits


# ----------------------------- main ------------------------------------------
if __name__ == "__main__":
    key = jax.random.PRNGKey(0)
    k_tok, k_param = jax.random.split(key)

    tokens = jax.random.randint(k_tok, (B, S), 0, V, dtype=jnp.int32)  # batch['token']
    f32_params, kernel_params = init_params(k_param)
    emb_table, wp, bp, adj, wg, wo, bo = f32_params

    logits = hiflaky_forward(tokens, *kernel_params)
    logits = jax.block_until_ready(logits)

    ref = reference_forward(tokens, emb_table, wp, bp, adj, wg, wo, bo)
    assert logits.shape == (B, L)
    # bf16 matmul operands (f32 accumulation) -> relaxed tolerance vs the f32 reference.
    assert jnp.allclose(logits, ref, atol=2e-2, rtol=2e-2)

    print("KERNEL_OK")
</pallas_src>

<mosaic_0001>
module attributes {stable_mosaic.version = 11 : i64} {
  func.func @hiflaky_kernel(%arg0: memref<8x8xi32, #tpu.memory_space<vmem>>, %arg1: memref<128x32xbf16, #tpu.memory_space<vmem>>, %arg2: memref<32x128xbf16, #tpu.memory_space<vmem>>, %arg3: memref<1x128xf32, #tpu.memory_space<vmem>>, %arg4: memref<128x128xbf16, #tpu.memory_space<vmem>>, %arg5: memref<128x128xbf16, #tpu.memory_space<vmem>>, %arg6: memref<1x128xf32, #tpu.memory_space<vmem>>, %arg7: memref<8x128xf32, #tpu.memory_space<vmem>>) attributes {dimension_semantics = [], scalar_prefetch = 0 : i64, scratch_operands = 0 : i64, tpu.core_type = #tpu.core_type<tc>} {
    %c0 = arith.constant 0 : index
    %c0_0 = arith.constant 0 : index
    %0 = vector.load %arg0[%c0, %c0_0] : memref<8x8xi32, #tpu.memory_space<vmem>>, vector<8x8xi32>
    %1 = tpu.iota {dimensions = array<i32: 1>} : vector<8x128xi32>
    %cst = arith.constant 0.000000e+00 : bf16
    %2 = vector.broadcast %cst : bf16 to vector<8x128xbf16>
    %3 = vector.extract_strided_slice %0 {offsets = [0, 0], sizes = [8, 1], strides = [1, 1]} : vector<8x8xi32> to vector<8x1xi32>
    %4 = vector.broadcast %3 : vector<8x1xi32> to vector<8x128xi32>
    %5 = arith.cmpi eq, %4, %1 : vector<8x128xi32>
    %6 = arith.extui %5 : vector<8x128xi1> to vector<8x128xi32>
    %7 = arith.sitofp %6 : vector<8x128xi32> to vector<8x128xf32>
    %8 = arith.truncf %7 : vector<8x128xf32> to vector<8x128xbf16>
    %9 = arith.addf %2, %8 : vector<8x128xbf16>
    %10 = vector.extract_strided_slice %0 {offsets = [0, 1], sizes = [8, 1], strides = [1, 1]} : vector<8x8xi32> to vector<8x1xi32>
    %11 = vector.broadcast %10 : vector<8x1xi32> to vector<8x128xi32>
    %12 = arith.cmpi eq, %11, %1 : vector<8x128xi32>
    %13 = arith.extui %12 : vector<8x128xi1> to vector<8x128xi32>
    %14 = arith.sitofp %13 : vector<8x128xi32> to vector<8x128xf32>
    %15 = arith.truncf %14 : vector<8x128xf32> to vector<8x128xbf16>
    %16 = arith.addf %9, %15 : vector<8x128xbf16>
    %17 = vector.extract_strided_slice %0 {offsets = [0, 2], sizes = [8, 1], strides = [1, 1]} : vector<8x8xi32> to vector<8x1xi32>
    %18 = vector.broadcast %17 : vector<8x1xi32> to vector<8x128xi32>
    %19 = arith.cmpi eq, %18, %1 : vector<8x128xi32>
    %20 = arith.extui %19 : vector<8x128xi1> to vector<8x128xi32>
    %21 = arith.sitofp %20 : vector<8x128xi32> to vector<8x128xf32>
    %22 = arith.truncf %21 : vector<8x128xf32> to vector<8x128xbf16>
    %23 = arith.addf %16, %22 : vector<8x128xbf16>
    %24 = vector.extract_strided_slice %0 {offsets = [0, 3], sizes = [8, 1], strides = [1, 1]} : vector<8x8xi32> to vector<8x1xi32>
    %25 = vector.broadcast %24 : vector<8x1xi32> to vector<8x128xi32>
    %26 = arith.cmpi eq, %25, %1 : vector<8x128xi32>
    %27 = arith.extui %26 : vector<8x128xi1> to vector<8x128xi32>
    %28 = arith.sitofp %27 : vector<8x128xi32> to vector<8x128xf32>
    %29 = arith.truncf %28 : vector<8x128xf32> to vector<8x128xbf16>
    %30 = arith.addf %23, %29 : vector<8x128xbf16>
    %31 = vector.extract_strided_slice %0 {offsets = [0, 4], sizes = [8, 1], strides = [1, 1]} : vector<8x8xi32> to vector<8x1xi32>
    %32 = vector.broadcast %31 : vector<8x1xi32> to vector<8x128xi32>
    %33 = arith.cmpi eq, %32, %1 : vector<8x128xi32>
    %34 = arith.extui %33 : vector<8x128xi1> to vector<8x128xi32>
    %35 = arith.sitofp %34 : vector<8x128xi32> to vector<8x128xf32>
    %36 = arith.truncf %35 : vector<8x128xf32> to vector<8x128xbf16>
    %37 = arith.addf %30, %36 : vector<8x128xbf16>
    %38 = vector.extract_strided_slice %0 {offsets = [0, 5], sizes = [8, 1], strides = [1, 1]} : vector<8x8xi32> to vector<8x1xi32>
    %39 = vector.broadcast %38 : vector<8x1xi32> to vector<8x128xi32>
    %40 = arith.cmpi eq, %39, %1 : vector<8x128xi32>
    %41 = arith.extui %40 : vector<8x128xi1> to vector<8x128xi32>
    %42 = arith.sitofp %41 : vector<8x128xi32> to vector<8x128xf32>
    %43 = arith.truncf %42 : vector<8x128xf32> to vector<8x128xbf16>
    %44 = arith.addf %37, %43 : vector<8x128xbf16>
    %45 = vector.extract_strided_slice %0 {offsets = [0, 6], sizes = [8, 1], strides = [1, 1]} : vector<8x8xi32> to vector<8x1xi32>
    %46 = vector.broadcast %45 : vector<8x1xi32> to vector<8x128xi32>
    %47 = arith.cmpi eq, %46, %1 : vector<8x128xi32>
    %48 = arith.extui %47 : vector<8x128xi1> to vector<8x128xi32>
    %49 = arith.sitofp %48 : vector<8x128xi32> to vector<8x128xf32>
    %50 = arith.truncf %49 : vector<8x128xf32> to vector<8x128xbf16>
    %51 = arith.addf %44, %50 : vector<8x128xbf16>
    %52 = vector.extract_strided_slice %0 {offsets = [0, 7], sizes = [8, 1], strides = [1, 1]} : vector<8x8xi32> to vector<8x1xi32>
    %53 = vector.broadcast %52 : vector<8x1xi32> to vector<8x128xi32>
    %54 = arith.cmpi eq, %53, %1 : vector<8x128xi32>
    %55 = arith.extui %54 : vector<8x128xi1> to vector<8x128xi32>
    %56 = arith.sitofp %55 : vector<8x128xi32> to vector<8x128xf32>
    %57 = arith.truncf %56 : vector<8x128xf32> to vector<8x128xbf16>
    %58 = arith.addf %51, %57 : vector<8x128xbf16>
    %c0_1 = arith.constant 0 : index
    %c0_2 = arith.constant 0 : index
    %59 = vector.load %arg1[%c0_1, %c0_2] : memref<128x32xbf16, #tpu.memory_space<vmem>>, vector<128x32xbf16>
    %cst_3 = arith.constant dense<0.000000e+00> : vector<8x32xf32>
    %60 = tpu.matmul %58, %59, %cst_3 {dimension_numbers = #tpu.dot_dimension_numbers<[1], [0], [0], [1], [0, 0, 1, 1], [], []>} : vector<8x128xbf16>, vector<128x32xbf16>, vector<8x32xf32> -> vector<8x32xf32>
    %61 = arith.truncf %60 : vector<8x32xf32> to vector<8x32xbf16>
    %c0_4 = arith.constant 0 : index
    %c0_5 = arith.constant 0 : index
    %62 = vector.load %arg2[%c0_4, %c0_5] : memref<32x128xbf16, #tpu.memory_space<vmem>>, vector<32x128xbf16>
    %cst_6 = arith.constant dense<0.000000e+00> : vector<8x128xf32>
    %63 = tpu.matmul %61, %62, %cst_6 {dimension_numbers = #tpu.dot_dimension_numbers<[1], [0], [0], [1], [0, 0, 1, 1], [], []>} : vector<8x32xbf16>, vector<32x128xbf16>, vector<8x128xf32> -> vector<8x128xf32>
    %c0_7 = arith.constant 0 : index
    %c0_8 = arith.constant 0 : index
    %64 = vector.load %arg3[%c0_7, %c0_8] : memref<1x128xf32, #tpu.memory_space<vmem>>, vector<1x128xf32>
    %65 = vector.broadcast %64 : vector<1x128xf32> to vector<8x128xf32>
    %66 = arith.addf %63, %65 : vector<8x128xf32>
    %cst_9 = arith.constant 0.000000e+00 : f32
    %67 = vector.broadcast %cst_9 : f32 to vector<8x128xf32>
    %68 = arith.maximumf %66, %67 : vector<8x128xf32>
    %69 = arith.truncf %68 : vector<8x128xf32> to vector<8x128xbf16>
    %c0_10 = arith.constant 0 : index
    %c0_11 = arith.constant 0 : index
    %70 = vector.load %arg4[%c0_10, %c0_11] : memref<128x128xbf16, #tpu.memory_space<vmem>>, vector<128x128xbf16>
    %cst_12 = arith.constant dense<0.000000e+00> : vector<8x128xf32>
    %71 = tpu.matmul %69, %70, %cst_12 {dimension_numbers = #tpu.dot_dimension_numbers<[1], [0], [0], [1], [0, 0, 1, 1], [], []>} : vector<8x128xbf16>, vector<128x128xbf16>, vector<8x128xf32> -> vector<8x128xf32>
    %cst_13 = arith.constant 0.000000e+00 : f32
    %72 = vector.broadcast %cst_13 : f32 to vector<8x128xf32>
    %73 = arith.maximumf %71, %72 : vector<8x128xf32>
    %74 = arith.truncf %73 : vector<8x128xf32> to vector<8x128xbf16>
    %c0_14 = arith.constant 0 : index
    %c0_15 = arith.constant 0 : index
    %75 = vector.load %arg5[%c0_14, %c0_15] : memref<128x128xbf16, #tpu.memory_space<vmem>>, vector<128x128xbf16>
    %cst_16 = arith.constant dense<0.000000e+00> : vector<8x128xf32>
    %76 = tpu.matmul %74, %75, %cst_16 {dimension_numbers = #tpu.dot_dimension_numbers<[1], [0], [0], [1], [0, 0, 1, 1], [], []>} : vector<8x128xbf16>, vector<128x128xbf16>, vector<8x128xf32> -> vector<8x128xf32>
    %c0_17 = arith.constant 0 : index
    %c0_18 = arith.constant 0 : index
    %77 = vector.load %arg6[%c0_17, %c0_18] : memref<1x128xf32, #tpu.memory_space<vmem>>, vector<1x128xf32>
    %78 = vector.broadcast %77 : vector<1x128xf32> to vector<8x128xf32>
    %79 = arith.addf %76, %78 : vector<8x128xf32>
    %c0_19 = arith.constant 0 : index
    %c0_20 = arith.constant 0 : index
    %80 = vector.load %arg7[%c0_19, %c0_20] : memref<8x128xf32, #tpu.memory_space<vmem>>, vector<8x128xf32>
    tpu.vector_store %arg7[%c0_19, %c0_20], %79 {strides = array<i32>} : memref<8x128xf32, #tpu.memory_space<vmem>>, vector<8x128xf32>,
    return
  }
}

</mosaic_0001>

<bundles_post_ra>
// kernel: tpu_custom_call.1
= control target key start
LH: loop header
LB: loop body
LE: loop exit
PB: predicated region body
PF: predicated region fallthrough
CT: control target
= control target key end

     0   :  { %12 = vsyncpa [#allocation3], 0  ;;  %s809_s0 = inlined_call_operand.hbm [shape: s32[8,8], index: 0, kind: input, shape index: {}]   ;;  %s810_s1 = inlined_call_operand.vmem [shape: bf16[128,32], index: 1, kind: input, shape index: {}]   ;;  %s811_s2 = inlined_call_operand.vmem [shape: bf16[32,128], index: 2, kind: input, shape index: {}]   ;;  %s812_s3 = inlined_call_operand.vmem [shape: f32[1,128], index: 3, kind: input, shape index: {}]   ;;  %s813_s4 = inlined_call_operand.vmem [shape: bf16[128,128], index: 4, kind: input, shape index: {}]   ;;  %s814_s5 = inlined_call_operand.hbm [shape: bf16[128,128], index: 5, kind: input, shape index: {}]   ;;  %s815_s6 = inlined_call_operand.vmem [shape: f32[1,128], index: 6, kind: input, shape index: {}]   ;;  %s816_s7 = inlined_call_operand.hbm [shape: f32[8,128], index: 7, kind: output, shape index: {}]  }
   0x1   :  { %13 = vsyncpa [#allocation6], 0 }
   0x2   :  { %14 = vsyncpa [#allocation4], 0  ;;  %s20_s26 = sshll.u32 %s809_s0, 4  ;;  %s686_s27 = smov [#allocation2]   ;;  %s21_s26 = int_to_ptr.hbm [resolvable:$true] %s20_s26 }
   0x3   :  { %s22_s28 = sshll.u32 %s686_s27, 4  ;;  %s38_s8 = sshll.u32 %s814_s5, 4  ;;  %s23_s28 = int_to_ptr.vmem [resolvable:$true] %s22_s28  ;;  %s39_s8 = int_to_ptr.hbm [resolvable:$true] %s38_s8 }
   0x4   :  { %25 = dma.hbm_to_vmem [thread:$0]  %s21_s26, 128, %s23_s28, [#allocation3]  }
   0x5   :  { %s687_s9 = smov [#allocation5]   ;;  %s688_s11 = smov 64  }
   0x6   :  { %s40_s10 = sshll.u32 %s687_s9, 4  ;;  %s689_s12 = smov 4   ;;  %s41_s10 = int_to_ptr.vmem [resolvable:$true] %s40_s10 }
   0x7   :  { %46 = dma.hbm_to_vmem [thread:$0]  %s39_s8, 1024, %s41_s10, [#allocation6], %s688_s11, %s688_s11, %s689_s12  }
   0x8   :  { %680 = dma.done.wait [#allocation3], 128  }
   0x9   :  { %681 = vsyncadd [#allocation3], 4294967168 }
   0xa   :  { %682 = dma.done.wait [#allocation6], 1024  }
   0xb   :  { %683 = vsyncadd [#allocation6], 4294966272  ;;  %v690_v0 = vmov 0   ;;  %v691_v1 = vmov 2   ;;  %v692_v2 = vmov 4   ;;  %v58_v3 = vld [vmem:[#allocation2] sm:$0xff]  ;;  %v59_v13 = vlaneseq }
   0xc   :  { %597 = vset.pattern.permute.xlu0 %v690_v0  ;;  %599 = vset.pattern.permute.xlu1 %v691_v1  ;;  %v693_v4 = vmov 1   ;;  %v694_v5 = vmov 3   ;;  %v695_v6 = vmov 5   ;;  %v696_v7 = vmov 6   ;;  %v564_v9 = vld [vmem:[%s810_s1 + $0x38] sm:$0xff]  ;;  %v563_v10 = vld [vmem:[%s810_s1 + $0x30] sm:$0xff] }
   0xd   :  { %601 = vset.pattern.permute.xlu2 %v692_v2  ;;  %62 = vperm.xlu0 %597, %v58_v3   ;;  %v697_v8 = vmov 7   ;;  %v562_v11 = vld [vmem:[%s810_s1 + $0x28] sm:$0xff]  ;;  %v561_v12 = vld [vmem:[%s810_s1 + $0x20] sm:$0xff]  ;;  %v560_v15 = vld [vmem:[%s810_s1 + $0x18] sm:$0xff]  ;;  %v60_v16 = vand.u32 127, %v59_v13  ;;  %v698_v20 = vmov 0.0  }
   0xe   :  { %83 = vperm.xlu1 %599, %v58_v3   ;;  %105 = vperm.xlu2 %601, %v58_v3   ;;  %v559_v18 = vld [vmem:[%s810_s1 + $0x10] sm:$0xff]  ;;  %v558_v23 = vld [vmem:[%s810_s1 + $0x8] sm:$0xff]  ;;  %v557_v26 = vld [vmem:[%s810_s1] sm:$0xff]  ;;  %vm246_vm8 = vcmask 261120   ;;  %s433_s26 = sshll.u32 %s816_s7, 4  ;;  %s434_s26 = int_to_ptr.hbm [resolvable:$true] %s433_s26 }
   0xf   :  { %212 = vmatpush.bf16.msra.mxu0 %v564_v9  ;;  %v566_v33 = vld [vmem:[%s811_s2 + $0x8] sm:$0xff]  ;;  %v565_v57 = vld [vmem:[%s811_s2] sm:$0xff]  ;;  %v574_v58 = vld [vmem:[%s813_s4 + $0x38] sm:$0xff] }
  0x10   :  { %256 = vmatpush.bf16.msra.mxu1 %v566_v33  ;;  %329 = vmatpush.bf16.msra.mxu2 %v574_v58  ;;  %v573_v59 = vld [vmem:[%s813_s4 + $0x30] sm:$0xff]  ;;  %v572_v60 = vld [vmem:[%s813_s4 + $0x28] sm:$0xff]  ;;  %v571_v61 = vld [vmem:[%s813_s4 + $0x20] sm:$0xff] }
  0x11   :  { %v570_v62 = vld [vmem:[%s813_s4 + $0x18] sm:$0xff]  ;;  %v569_v63 = vld [vmem:[%s813_s4 + $0x10] sm:$0xff]  ;;  %v578_v9 = vld [vmem:[#allocation5 + $0x18] sm:$0xff] }
  0x13   :  { %213 = vmatpush.bf16.msra.mxu0 %v563_v10  ;;  %v577_v10 = vld [vmem:[#allocation5 + $0x10] sm:$0xff] }
  0x14   :  { %257 = vmatpush.bf16.msra.mxu1 %v565_v57  ;;  %330 = vmatpush.bf16.msra.mxu2 %v573_v59 }
  0x15   :  { %598 = vset.pattern.permute.xlu0 %v693_v4  ;;  %v567_v4 = vld [vmem:[%s813_s4] sm:$0xff] }
  0x16   :  { %600 = vset.pattern.permute.xlu1 %v694_v5  ;;  %72 = vperm.xlu0 %598, %v58_v3   ;;  %v582_v5 = vld [vmem:[#allocation5 + $0x38] sm:$0xff] }
  0x17   :  { %94 = vperm.xlu1 %600, %v58_v3   ;;  %602 = vset.pattern.permute.xlu2 %v695_v6  ;;  %v581_v6 = vld [vmem:[#allocation5 + $0x30] sm:$0xff] }
  0x18   :  { %116 = vperm.xlu2 %602, %v58_v3   ;;  %214 = vmatpush.bf16.msra.mxu0 %v562_v11  ;;  %v606_v11 = vld [vmem:[%s812_s3] ss:$0 sm:$0xff]  ;;  %s699_s3 = smov [#allocation7]  }
  0x19   :  { %331 = vmatpush.bf16.msra.mxu2 %v572_v60  ;;  %412 = vmatpush.bf16.msra.mxu3 %v582_v5  ;;  %s431_s23 = sshll.u32 %s699_s3, 4  ;;  %s432_s23 = int_to_ptr.vmem [resolvable:$true] %s431_s23 }
  0x1c   :  { %215 = vmatpush.bf16.msra.mxu0 %v561_v12  ;;  %v576_v12 = vld [vmem:[#allocation5 + $0x8] sm:$0xff] }
  0x1d   :  { %332 = vmatpush.bf16.msra.mxu2 %v571_v61  ;;  %413 = vmatpush.bf16.msra.mxu3 %v581_v6 }
  0x1e   :  { %605 = vset.pattern.permute.xlu0 %v697_v8 }
  0x1f   :  { %603 = vset.pattern.permute.xlu1 %v696_v7  ;;  %v580_v7 = vld [vmem:[#allocation5 + $0x28] sm:$0xff] }
  0x20   :  { %127 = vperm.xlu1 %603, %v58_v3   ;;  %604 = vset.pattern.permute.xlu2 %v697_v8  ;;  %v579_v8 = vld [vmem:[#allocation5 + $0x20] sm:$0xff] }
  0x21   :  { %138 = vperm.xlu2 %604, %v58_v3   ;;  %216 = vmatpush.bf16.msra.mxu0 %v560_v15  ;;  %v568_v3 = vld [vmem:[%s813_s4 + $0x8] sm:$0xff] }
  0x22   :  { %333 = vmatpush.bf16.msra.mxu2 %v570_v62  ;;  %414 = vmatpush.bf16.msra.mxu3 %v580_v7 }
  0x25   :  { %217 = vmatpush.bf16.msra.mxu0 %v559_v18  ;;  %v575_v18 = vld [vmem:[#allocation5] sm:$0xff] }
  0x26   :  { %334 = vmatpush.bf16.msra.mxu2 %v569_v63  ;;  %415 = vmatpush.bf16.msra.mxu3 %v579_v8 }
  0x29   :  { %218 = vmatpush.bf16.msra.mxu0 %v558_v23  ;;  %v607_v23 = vld [vmem:[%s815_s6] ss:$0 sm:$0xff] }
  0x2a   :  { %335 = vmatpush.bf16.msra.mxu2 %v568_v3  ;;  %416 = vmatpush.bf16.msra.mxu3 %v578_v9 }
  0x2d   :  { %219 = vmatpush.bf16.msra.mxu0 %v557_v26 }
  0x2e   :  { %336 = vmatpush.bf16.msra.mxu2 %v567_v4  ;;  %417 = vmatpush.bf16.msra.mxu3 %v577_v10 }
  0x32   :  { %418 = vmatpush.bf16.msra.mxu3 %v576_v12 }
  0x36   :  { %419 = vmatpush.bf16.msra.mxu3 %v575_v18 }
  0x68   :  { %v106_v30 = vpop.permute.xlu2 %105 }
  0x69   :  { %vm107_vm4 = vcmp.eq.s32.totalorder %v106_v30, %v60_v16 }
  0x6a   :  { %v448_v40 = vsel %vm107_vm4, 1.0, %v698_v20 }
  0x72   :  { %v117_v38 = vpop.permute.xlu2 %116 }
  0x73   :  { %vm118_vm5 = vcmp.eq.s32.totalorder %v117_v38, %v60_v16 }
  0x74   :  { %v449_v43 = vsel %vm118_vm5, 1.0, %v698_v20 }
  0x7b   :  { %v139_v49 = vpop.permute.xlu2 %138 }
  0x7c   :  { %vm140_vm7 = vcmp.eq.s32.totalorder %v139_v49, %v60_v16 }
  0x7d   :  { %v451_v53 = vsel %vm140_vm7, 1.0, %v698_v20 }
  0x7f   :  { %v63_v14 = vpop.permute.xlu0 %62 }
  0x80   :  { %v84_v17 = vpop.permute.xlu1 %83  ;;  %vm64_vm0 = vcmp.eq.s32.totalorder %v63_v14, %v60_v16 }
  0x81   :  { %v444_v21 = vsel %vm64_vm0, 1.0, %v698_v20  ;;  %vm85_vm2 = vcmp.eq.s32.totalorder %v84_v17, %v60_v16 }
  0x82   :  { %v446_v29 = vsel %vm85_vm2, 1.0, %v698_v20 }
  0x88   :  { %v73_v19 = vpop.permute.xlu0 %72 }
  0x89   :  { %vm74_vm1 = vcmp.eq.s32.totalorder %v73_v19, %v60_v16  ;;  %v95_v27 = vpop.permute.xlu1 %94 }
  0x8a   :  { %v445_v22 = vsel %vm74_vm1, 1.0, %v698_v20  ;;  %vm96_vm3 = vcmp.eq.s32.totalorder %v95_v27, %v60_v16 }
  0x8b   :  { %v80_v24 = vadd.f32 %v445_v22, %v444_v21  ;;  %v447_v34 = vsel %vm96_vm3, 1.0, %v698_v20 }
  0x8d   :  { %v81_v25 = vpack.c.bf16 %v80_v24, %v80_v24 }
  0x8f   :  { %v89_v28 = vunpack.c.l.bf16 %v81_v25 }
  0x91   :  { %v91_v31 = vadd.f32 %v446_v29, %v89_v28 }
  0x92   :  { %v128_v44 = vpop.permute.xlu1 %127 }
  0x93   :  { %v92_v32 = vpack.c.bf16 %v91_v31, %v91_v31  ;;  %vm129_vm6 = vcmp.eq.s32.totalorder %v128_v44, %v60_v16 }
  0x94   :  { %v450_v48 = vsel %vm129_vm6, 1.0, %v698_v20 }
  0x95   :  { %v100_v35 = vunpack.c.l.bf16 %v92_v32 }
  0x97   :  { %v102_v36 = vadd.f32 %v447_v34, %v100_v35 }
  0x99   :  { %v103_v37 = vpack.c.bf16 %v102_v36, %v102_v36 }
  0x9b   :  { %v111_v39 = vunpack.c.l.bf16 %v103_v37 }
  0x9d   :  { %v113_v41 = vadd.f32 %v448_v40, %v111_v39 }
  0x9f   :  { %v114_v42 = vpack.c.bf16 %v113_v41, %v113_v41 }
  0xa1   :  { %v122_v45 = vunpack.c.l.bf16 %v114_v42 }
  0xa3   :  { %v124_v46 = vadd.f32 %v449_v43, %v122_v45 }
  0xa5   :  { %v125_v47 = vpack.c.bf16 %v124_v46, %v124_v46 }
  0xa7   :  { %v133_v50 = vunpack.c.l.bf16 %v125_v47 }
  0xa9   :  { %v135_v51 = vadd.f32 %v450_v48, %v133_v50 }
  0xab   :  { %v136_v52 = vpack.c.bf16 %v135_v51, %v135_v51 }
  0xad   :  { %v144_v54 = vunpack.c.l.bf16 %v136_v52 }
  0xaf   :  { %v146_v55 = vadd.f32 %v451_v53, %v144_v54 }
  0xb1   :  { %v147_v56 = vpack.c.bf16 %v146_v55, %v146_v55 }
  0xb3   :  { %220 = vmatmul.bf16.vlgmr.msra.gmra.mxu0 %v147_v56 }
 0x130   :  { %v221_v0 = vpop.f32.mrf.mxu0 }
 0x131   :  { %v225_v1 = vpack.c.bf16 %v221_v0, %v221_v0 }
 0x133   :  { %492 = vmatmul.msk.bf16.vlgmr.msra.gmra.mxu1 %vm246_vm8, %v225_v1 }
 0x138   :  { %v223_v2 = vpop.f32.mrf.mxu0 }
 0x1b0   :  { %v259_v13 = vpop.f32.mrf.mxu1 }
 0x1b1   :  { %v260_v14 = vadd.f32 %v606_v11, %v259_v13 }
 0x1b3   :  { %v263_v15 = vmax.f32 %v260_v14, 0.0 }
 0x1b5   :  { %v264_v16 = vpack.c.bf16 %v263_v15, %v263_v15 }
 0x1b7   :  { %337 = vmatmul.bf16.vlgmr.msra.gmra.mxu2 %v264_v16 }
 0x1b8   :  { %v261_v17 = vpop.f32.mrf.mxu1 }
 0x23a   :  { %v338_v19 = vpop.f32.mrf.mxu2 }
 0x23b   :  { %v342_v20 = vmax.f32 %v338_v19, 0.0 }
 0x23d   :  { %v343_v21 = vpack.c.bf16 %v342_v20, %v342_v20 }
 0x23f   :  { %420 = vmatmul.bf16.vlgmr.msra.gmra.mxu3 %v343_v21 }
 0x242   :  { %v340_v22 = vpop.f32.mrf.mxu2 }
 0x2c2   :  { %v421_v24 = vpop.f32.mrf.mxu3 }
 0x2c3   :  { %v422_v25 = vadd.f32 %v607_v23, %v421_v24 }
 0x2c5   :  { %425 = vst [vmem:[#allocation7] sm:$0xff] %v422_v25 }
 0x2c6   :  { %436 = dma.vmem_to_hbm [thread:$0]  %s432_s23, 128, %s434_s26, [#allocation4]  }
 0x2ca   :  { %v423_v26 = vpop.f32.mrf.mxu3 }
 0x2cb   :  { %684 = dma.done.wait [#allocation4], 128  }
 0x2cc   :  { %685 = vsyncadd [#allocation4], 4294967168 }
 0x2cd   :  { %441 = vsyncpa [#allocation3], 1 }
 0x2ce   :  { %442 = vsyncpa [#allocation6], 1 }
 0x2cf   :  { %443 = vsyncpa [#allocation4], 1 }

</bundles_post_ra>
